<compile_context>
chip_gen: v5e
topology: v5e:2x2
jax: 0.10.0
libtpu: 0.0.40
codegen_flags: <defaults>
</compile_context>

<pallas_src>
import jax
import jax.numpy as jnp
from jax.experimental import pallas as pl
from jax.experimental.pallas import tpu as pltpu


def _cdiv(a, b):
    return -(-a // b)


def _round_up(x, m):
    return ((x + m - 1) // m) * m


def _agg_kernel(w_ref, b_ref, lq_ref, rf_ref, o_ref):
    # w_ref: SMEM (3, 6) folded weights; columns 0:3 act on lq, 3:6 on rf.
    # b_ref: SMEM (3,)   folded bias.
    # lq_ref, rf_ref, o_ref: VMEM blocks of shape (1, 3, TILE_R, C).
    f32 = jnp.float32
    for co in range(3):
        # One fused scalar*tile multiply-add chain per output channel, stored once.
        acc = (w_ref[co, 0] * lq_ref[0, 0].astype(f32)
               + w_ref[co, 3] * rf_ref[0, 0].astype(f32)
               + w_ref[co, 1] * lq_ref[0, 1].astype(f32)
               + w_ref[co, 4] * rf_ref[0, 1].astype(f32)
               + w_ref[co, 2] * lq_ref[0, 2].astype(f32)
               + w_ref[co, 5] * rf_ref[0, 2].astype(f32)
               + b_ref[co])
        o_ref[0, co] = acc.astype(o_ref.dtype)


def simple_aggregation_pallas(lq, rf, w_lq, b_lq, w_rf, b_rf, *,
                              max_lane_width=512, max_rows_per_step=256):
    """
    lq, rf: [b, 3, h, w]   (NCHW, matching the PyTorch module)
    w_lq, w_rf: [3, 6]     (Conv2d(6, 3, 1) weights squeezed)
    b_lq, b_rf: [3]
    returns: [b, 3, h, w]  in the inputs' dtype.
    """
    b, c, h, w = lq.shape
    assert c == 3 and rf.shape == lq.shape
    p = h * w
    out_dtype = jnp.result_type(lq.dtype, rf.dtype)
    itemsize = jnp.dtype(out_dtype).itemsize
    LANE = 128

    # ---- layout: pixel axis -> (rows, C) with lane-dense C --------------------------------
    if p % LANE == 0:
        # Widest multiple of 128 (<= max_lane_width) that divides p exactly: no pad/slice.
        C = LANE
        for cand in range(max_lane_width, LANE - 1, -LANE):
            if p % cand == 0:
                C = cand
                break
        p_pad = p
    else:
        # TODO(synk): rare fallback for non-128-aligned h*w -- costs one pad + one slice pass.
        C = min(max_lane_width, _round_up(p, LANE))
        p_pad = _round_up(p, C)
    R_total = p_pad // C

    # ---- row tiling ------------------------------------------------------------------------
    sub = 8 if itemsize >= 4 else 16                 # sublane multiple (f32 vs bf16/fp16)
    TILE_R = min(max_rows_per_step, R_total)
    if TILE_R < R_total:
        TILE_R = max(sub, (TILE_R // sub) * sub)
    # v7x megacore: keep at least ~4 parallel grid steps when rows can still be split.
    while (b * _cdiv(R_total, TILE_R)) < 4 and TILE_R >= 2 * sub and TILE_R % (2 * sub) == 0:
        TILE_R //= 2
    n_row_steps = _cdiv(R_total, TILE_R)

    # ---- inputs: native dtype, layout-free reshape (pad only in the fallback path) ---------
    lq3 = lq.reshape(b, 3, p)
    rf3 = rf.reshape(b, 3, p)
    if p_pad != p:
        pad = ((0, 0), (0, 0), (0, p_pad - p))
        lq3 = jnp.pad(lq3, pad)
        rf3 = jnp.pad(rf3, pad)
    lq4 = lq3.reshape(b, 3, R_total, C)
    rf4 = rf3.reshape(b, 3, R_total, C)

    # ---- fold the two convs into one affine transform --------------------------------------
    w_sum = w_lq.astype(jnp.float32) + w_rf.astype(jnp.float32)   # (3, 6)
    b_sum = b_lq.astype(jnp.float32) + b_rf.astype(jnp.float32)   # (3,)

    blk = (1, 3, TILE_R, C)
    out4 = pl.pallas_call(
        _agg_kernel,
        out_shape=jax.ShapeDtypeStruct((b, 3, R_total, C), out_dtype),
        grid=(b, n_row_steps),
        in_specs=[
            pl.BlockSpec(memory_space=pltpu.MemorySpace.SMEM),   # folded weights (3,6)
            pl.BlockSpec(memory_space=pltpu.MemorySpace.SMEM),   # folded bias (3,)
            pl.BlockSpec(blk, lambda bi, ri: (bi, 0, ri, 0)),    # lq block
            pl.BlockSpec(blk, lambda bi, ri: (bi, 0, ri, 0)),    # rf block
        ],
        out_specs=pl.BlockSpec(blk, lambda bi, ri: (bi, 0, ri, 0)),
        compiler_params=pltpu.CompilerParams(
            dimension_semantics=("parallel", "parallel"),
            vmem_limit_bytes=32 * 1024 * 1024),
        cost_estimate=pl.CostEstimate(
            flops=36 * b * p,                      # 3 out ch x (6 mul + 6 add) per pixel
            transcendentals=0,
            bytes_accessed=9 * b * p * itemsize),  # 6 channel reads + 3 writes per pixel
    )(w_sum, b_sum, lq4, rf4)

    if p_pad != p:
        out = out4.reshape(b, 3, p_pad)[:, :, :p].reshape(b, 3, h, w)
    else:
        out = out4.reshape(b, 3, h, w)
    return out


def _reference(lq, rf, w_lq, b_lq, w_rf, b_rf):
    merged = jnp.concatenate([lq, rf], axis=1)   # [b, 6, h, w]
    hp = jax.lax.Precision.HIGHEST
    out_lq = jnp.einsum("bchw,oc->bohw", merged, w_lq, precision=hp) + b_lq[None, :, None, None]
    out_rf = jnp.einsum("bchw,oc->bohw", merged, w_rf, precision=hp) + b_rf[None, :, None, None]
    return out_lq + out_rf


if __name__ == "__main__":
    key = jax.random.PRNGKey(0)
    k1, k2, k3, k4, k5, k6 = jax.random.split(key, 6)

    b, c, h, w = 2, 3, 16, 16
    lq = jax.random.normal(k1, (b, c, h, w), dtype=jnp.float32)
    rf = jax.random.normal(k2, (b, c, h, w), dtype=jnp.float32)

    # Deterministic "Conv2d(6, 3, 1)" parameters (weight [3,6,1,1] squeezed to [3,6]).
    w_lq = jax.random.normal(k3, (3, 6), dtype=jnp.float32) * 0.1
    b_lq = jax.random.normal(k4, (3,), dtype=jnp.float32) * 0.1
    w_rf = jax.random.normal(k5, (3, 6), dtype=jnp.float32) * 0.1
    b_rf = jax.random.normal(k6, (3,), dtype=jnp.float32) * 0.1

    out = simple_aggregation_pallas(lq, rf, w_lq, b_lq, w_rf, b_rf)
    out = jax.block_until_ready(out)

    ref = _reference(lq, rf, w_lq, b_lq, w_rf, b_rf)
    assert out.shape == (b, 3, h, w)
    assert out.dtype == lq.dtype
    assert jnp.allclose(out, ref, atol=1e-5, rtol=1e-5)

    print("KERNEL_OK")
</pallas_src>

<mosaic_0001>
module attributes {stable_mosaic.version = 11 : i64} {
  func.func @_agg_kernel(%arg0: i32, %arg1: i32, %arg2: memref<3x6xf32, #tpu.memory_space<smem>>, %arg3: memref<3xf32, #tpu.memory_space<smem>>, %arg4: memref<1x3x1x256xf32, #tpu.memory_space<vmem>>, %arg5: memref<1x3x1x256xf32, #tpu.memory_space<vmem>>, %arg6: memref<1x3x1x256xf32, #tpu.memory_space<vmem>>) attributes {dimension_semantics = [#tpu.dimension_semantics<parallel>, #tpu.dimension_semantics<parallel>], iteration_bounds = array<i64: 2, 1>, scalar_prefetch = 0 : i64, scratch_operands = 0 : i64, tpu.core_type = #tpu.core_type<tc>, window_params = [{transform_indices = @transform_0, window_bounds = array<i64: 3, 6>}, {transform_indices = @transform_1, window_bounds = array<i64: 3>}, {transform_indices = @transform_2, window_bounds = array<i64: 1, 3, 1, 256>}, {transform_indices = @transform_3, window_bounds = array<i64: 1, 3, 1, 256>}, {transform_indices = @transform_4, window_bounds = array<i64: 1, 3, 1, 256>}]} {
    %c0 = arith.constant 0 : index
    %c0_0 = arith.constant 0 : index
    %0 = memref.load %arg2[%c0, %c0_0] : memref<3x6xf32, #tpu.memory_space<smem>>
    %c0_1 = arith.constant 0 : index
    %c0_2 = arith.constant 0 : index
    %c0_3 = arith.constant 0 : index
    %c0_4 = arith.constant 0 : index
    %1 = vector.load %arg4[%c0_1, %c0_2, %c0_3, %c0_4] : memref<1x3x1x256xf32, #tpu.memory_space<vmem>>, vector<1x1x1x256xf32>
    %2 = vector.shape_cast %1 : vector<1x1x1x256xf32> to vector<1x256xf32>
    %3 = vector.broadcast %0 : f32 to vector<1x256xf32>
    %4 = arith.mulf %3, %2 : vector<1x256xf32>
    %c0_5 = arith.constant 0 : index
    %c3 = arith.constant 3 : index
    %5 = memref.load %arg2[%c0_5, %c3] : memref<3x6xf32, #tpu.memory_space<smem>>
    %c0_6 = arith.constant 0 : index
    %c0_7 = arith.constant 0 : index
    %c0_8 = arith.constant 0 : index
    %c0_9 = arith.constant 0 : index
    %6 = vector.load %arg5[%c0_6, %c0_7, %c0_8, %c0_9] : memref<1x3x1x256xf32, #tpu.memory_space<vmem>>, vector<1x1x1x256xf32>
    %7 = vector.shape_cast %6 : vector<1x1x1x256xf32> to vector<1x256xf32>
    %8 = vector.broadcast %5 : f32 to vector<1x256xf32>
    %9 = arith.mulf %8, %7 : vector<1x256xf32>
    %10 = arith.addf %4, %9 : vector<1x256xf32>
    %c0_10 = arith.constant 0 : index
    %c1 = arith.constant 1 : index
    %11 = memref.load %arg2[%c0_10, %c1] : memref<3x6xf32, #tpu.memory_space<smem>>
    %c0_11 = arith.constant 0 : index
    %c1_12 = arith.constant 1 : index
    %c0_13 = arith.constant 0 : index
    %c0_14 = arith.constant 0 : index
    %12 = vector.load %arg4[%c0_11, %c1_12, %c0_13, %c0_14] : memref<1x3x1x256xf32, #tpu.memory_space<vmem>>, vector<1x1x1x256xf32>
    %13 = vector.shape_cast %12 : vector<1x1x1x256xf32> to vector<1x256xf32>
    %14 = vector.broadcast %11 : f32 to vector<1x256xf32>
    %15 = arith.mulf %14, %13 : vector<1x256xf32>
    %16 = arith.addf %10, %15 : vector<1x256xf32>
    %c0_15 = arith.constant 0 : index
    %c4 = arith.constant 4 : index
    %17 = memref.load %arg2[%c0_15, %c4] : memref<3x6xf32, #tpu.memory_space<smem>>
    %c0_16 = arith.constant 0 : index
    %c1_17 = arith.constant 1 : index
    %c0_18 = arith.constant 0 : index
    %c0_19 = arith.constant 0 : index
    %18 = vector.load %arg5[%c0_16, %c1_17, %c0_18, %c0_19] : memref<1x3x1x256xf32, #tpu.memory_space<vmem>>, vector<1x1x1x256xf32>
    %19 = vector.shape_cast %18 : vector<1x1x1x256xf32> to vector<1x256xf32>
    %20 = vector.broadcast %17 : f32 to vector<1x256xf32>
    %21 = arith.mulf %20, %19 : vector<1x256xf32>
    %22 = arith.addf %16, %21 : vector<1x256xf32>
    %c0_20 = arith.constant 0 : index
    %c2 = arith.constant 2 : index
    %23 = memref.load %arg2[%c0_20, %c2] : memref<3x6xf32, #tpu.memory_space<smem>>
    %c0_21 = arith.constant 0 : index
    %c2_22 = arith.constant 2 : index
    %c0_23 = arith.constant 0 : index
    %c0_24 = arith.constant 0 : index
    %24 = vector.load %arg4[%c0_21, %c2_22, %c0_23, %c0_24] : memref<1x3x1x256xf32, #tpu.memory_space<vmem>>, vector<1x1x1x256xf32>
    %25 = vector.shape_cast %24 : vector<1x1x1x256xf32> to vector<1x256xf32>
    %26 = vector.broadcast %23 : f32 to vector<1x256xf32>
    %27 = arith.mulf %26, %25 : vector<1x256xf32>
    %28 = arith.addf %22, %27 : vector<1x256xf32>
    %c0_25 = arith.constant 0 : index
    %c5 = arith.constant 5 : index
    %29 = memref.load %arg2[%c0_25, %c5] : memref<3x6xf32, #tpu.memory_space<smem>>
    %c0_26 = arith.constant 0 : index
    %c2_27 = arith.constant 2 : index
    %c0_28 = arith.constant 0 : index
    %c0_29 = arith.constant 0 : index
    %30 = vector.load %arg5[%c0_26, %c2_27, %c0_28, %c0_29] : memref<1x3x1x256xf32, #tpu.memory_space<vmem>>, vector<1x1x1x256xf32>
    %31 = vector.shape_cast %30 : vector<1x1x1x256xf32> to vector<1x256xf32>
    %32 = vector.broadcast %29 : f32 to vector<1x256xf32>
    %33 = arith.mulf %32, %31 : vector<1x256xf32>
    %34 = arith.addf %28, %33 : vector<1x256xf32>
    %c0_30 = arith.constant 0 : index
    %35 = memref.load %arg3[%c0_30] : memref<3xf32, #tpu.memory_space<smem>>
    %36 = vector.broadcast %35 : f32 to vector<1x256xf32>
    %37 = arith.addf %34, %36 : vector<1x256xf32>
    %c0_31 = arith.constant 0 : index
    %c0_32 = arith.constant 0 : index
    %c0_33 = arith.constant 0 : index
    %c0_34 = arith.constant 0 : index
    %38 = vector.load %arg6[%c0_31, %c0_32, %c0_33, %c0_34] : memref<1x3x1x256xf32, #tpu.memory_space<vmem>>, vector<1x1x1x256xf32>
    %39 = vector.shape_cast %38 : vector<1x1x1x256xf32> to vector<1x256xf32>
    %40 = vector.shape_cast %37 : vector<1x256xf32> to vector<1x1x1x256xf32>
    tpu.vector_store %arg6[%c0_31, %c0_32, %c0_33, %c0_34], %40 {strides = array<i32>} : memref<1x3x1x256xf32, #tpu.memory_space<vmem>>, vector<1x1x1x256xf32>,
    %c1_35 = arith.constant 1 : index
    %c0_36 = arith.constant 0 : index
    %41 = memref.load %arg2[%c1_35, %c0_36] : memref<3x6xf32, #tpu.memory_space<smem>>
    %c0_37 = arith.constant 0 : index
    %c0_38 = arith.constant 0 : index
    %c0_39 = arith.constant 0 : index
    %c0_40 = arith.constant 0 : index
    %42 = vector.load %arg4[%c0_37, %c0_38, %c0_39, %c0_40] : memref<1x3x1x256xf32, #tpu.memory_space<vmem>>, vector<1x1x1x256xf32>
    %43 = vector.shape_cast %42 : vector<1x1x1x256xf32> to vector<1x256xf32>
    %44 = vector.broadcast %41 : f32 to vector<1x256xf32>
    %45 = arith.mulf %44, %43 : vector<1x256xf32>
    %c1_41 = arith.constant 1 : index
    %c3_42 = arith.constant 3 : index
    %46 = memref.load %arg2[%c1_41, %c3_42] : memref<3x6xf32, #tpu.memory_space<smem>>
    %c0_43 = arith.constant 0 : index
    %c0_44 = arith.constant 0 : index
    %c0_45 = arith.constant 0 : index
    %c0_46 = arith.constant 0 : index
    %47 = vector.load %arg5[%c0_43, %c0_44, %c0_45, %c0_46] : memref<1x3x1x256xf32, #tpu.memory_space<vmem>>, vector<1x1x1x256xf32>
    %48 = vector.shape_cast %47 : vector<1x1x1x256xf32> to vector<1x256xf32>
    %49 = vector.broadcast %46 : f32 to vector<1x256xf32>
    %50 = arith.mulf %49, %48 : vector<1x256xf32>
    %51 = arith.addf %45, %50 : vector<1x256xf32>
    %c1_47 = arith.constant 1 : index
    %c1_48 = arith.constant 1 : index
    %52 = memref.load %arg2[%c1_47, %c1_48] : memref<3x6xf32, #tpu.memory_space<smem>>
    %c0_49 = arith.constant 0 : index
    %c1_50 = arith.constant 1 : index
    %c0_51 = arith.constant 0 : index
    %c0_52 = arith.constant 0 : index
    %53 = vector.load %arg4[%c0_49, %c1_50, %c0_51, %c0_52] : memref<1x3x1x256xf32, #tpu.memory_space<vmem>>, vector<1x1x1x256xf32>
    %54 = vector.shape_cast %53 : vector<1x1x1x256xf32> to vector<1x256xf32>
    %55 = vector.broadcast %52 : f32 to vector<1x256xf32>
    %56 = arith.mulf %55, %54 : vector<1x256xf32>
    %57 = arith.addf %51, %56 : vector<1x256xf32>
    %c1_53 = arith.constant 1 : index
    %c4_54 = arith.constant 4 : index
    %58 = memref.load %arg2[%c1_53, %c4_54] : memref<3x6xf32, #tpu.memory_space<smem>>
    %c0_55 = arith.constant 0 : index
    %c1_56 = arith.constant 1 : index
    %c0_57 = arith.constant 0 : index
    %c0_58 = arith.constant 0 : index
    %59 = vector.load %arg5[%c0_55, %c1_56, %c0_57, %c0_58] : memref<1x3x1x256xf32, #tpu.memory_space<vmem>>, vector<1x1x1x256xf32>
    %60 = vector.shape_cast %59 : vector<1x1x1x256xf32> to vector<1x256xf32>
    %61 = vector.broadcast %58 : f32 to vector<1x256xf32>
    %62 = arith.mulf %61, %60 : vector<1x256xf32>
    %63 = arith.addf %57, %62 : vector<1x256xf32>
    %c1_59 = arith.constant 1 : index
    %c2_60 = arith.constant 2 : index
    %64 = memref.load %arg2[%c1_59, %c2_60] : memref<3x6xf32, #tpu.memory_space<smem>>
    %c0_61 = arith.constant 0 : index
    %c2_62 = arith.constant 2 : index
    %c0_63 = arith.constant 0 : index
    %c0_64 = arith.constant 0 : index
    %65 = vector.load %arg4[%c0_61, %c2_62, %c0_63, %c0_64] : memref<1x3x1x256xf32, #tpu.memory_space<vmem>>, vector<1x1x1x256xf32>
    %66 = vector.shape_cast %65 : vector<1x1x1x256xf32> to vector<1x256xf32>
    %67 = vector.broadcast %64 : f32 to vector<1x256xf32>
    %68 = arith.mulf %67, %66 : vector<1x256xf32>
    %69 = arith.addf %63, %68 : vector<1x256xf32>
    %c1_65 = arith.constant 1 : index
    %c5_66 = arith.constant 5 : index
    %70 = memref.load %arg2[%c1_65, %c5_66] : memref<3x6xf32, #tpu.memory_space<smem>>
    %c0_67 = arith.constant 0 : index
    %c2_68 = arith.constant 2 : index
    %c0_69 = arith.constant 0 : index
    %c0_70 = arith.constant 0 : index
    %71 = vector.load %arg5[%c0_67, %c2_68, %c0_69, %c0_70] : memref<1x3x1x256xf32, #tpu.memory_space<vmem>>, vector<1x1x1x256xf32>
    %72 = vector.shape_cast %71 : vector<1x1x1x256xf32> to vector<1x256xf32>
    %73 = vector.broadcast %70 : f32 to vector<1x256xf32>
    %74 = arith.mulf %73, %72 : vector<1x256xf32>
    %75 = arith.addf %69, %74 : vector<1x256xf32>
    %c1_71 = arith.constant 1 : index
    %76 = memref.load %arg3[%c1_71] : memref<3xf32, #tpu.memory_space<smem>>
    %77 = vector.broadcast %76 : f32 to vector<1x256xf32>
    %78 = arith.addf %75, %77 : vector<1x256xf32>
    %c0_72 = arith.constant 0 : index
    %c1_73 = arith.constant 1 : index
    %c0_74 = arith.constant 0 : index
    %c0_75 = arith.constant 0 : index
    %79 = vector.load %arg6[%c0_72, %c1_73, %c0_74, %c0_75] : memref<1x3x1x256xf32, #tpu.memory_space<vmem>>, vector<1x1x1x256xf32>
    %80 = vector.shape_cast %79 : vector<1x1x1x256xf32> to vector<1x256xf32>
    %81 = vector.shape_cast %78 : vector<1x256xf32> to vector<1x1x1x256xf32>
    tpu.vector_store %arg6[%c0_72, %c1_73, %c0_74, %c0_75], %81 {strides = array<i32>} : memref<1x3x1x256xf32, #tpu.memory_space<vmem>>, vector<1x1x1x256xf32>,
    %c2_76 = arith.constant 2 : index
    %c0_77 = arith.constant 0 : index
    %82 = memref.load %arg2[%c2_76, %c0_77] : memref<3x6xf32, #tpu.memory_space<smem>>
    %c0_78 = arith.constant 0 : index
    %c0_79 = arith.constant 0 : index
    %c0_80 = arith.constant 0 : index
    %c0_81 = arith.constant 0 : index
    %83 = vector.load %arg4[%c0_78, %c0_79, %c0_80, %c0_81] : memref<1x3x1x256xf32, #tpu.memory_space<vmem>>, vector<1x1x1x256xf32>
    %84 = vector.shape_cast %83 : vector<1x1x1x256xf32> to vector<1x256xf32>
    %85 = vector.broadcast %82 : f32 to vector<1x256xf32>
    %86 = arith.mulf %85, %84 : vector<1x256xf32>
    %c2_82 = arith.constant 2 : index
    %c3_83 = arith.constant 3 : index
    %87 = memref.load %arg2[%c2_82, %c3_83] : memref<3x6xf32, #tpu.memory_space<smem>>
    %c0_84 = arith.constant 0 : index
    %c0_85 = arith.constant 0 : index
    %c0_86 = arith.constant 0 : index
    %c0_87 = arith.constant 0 : index
    %88 = vector.load %arg5[%c0_84, %c0_85, %c0_86, %c0_87] : memref<1x3x1x256xf32, #tpu.memory_space<vmem>>, vector<1x1x1x256xf32>
    %89 = vector.shape_cast %88 : vector<1x1x1x256xf32> to vector<1x256xf32>
    %90 = vector.broadcast %87 : f32 to vector<1x256xf32>
    %91 = arith.mulf %90, %89 : vector<1x256xf32>
    %92 = arith.addf %86, %91 : vector<1x256xf32>
    %c2_88 = arith.constant 2 : index
    %c1_89 = arith.constant 1 : index
    %93 = memref.load %arg2[%c2_88, %c1_89] : memref<3x6xf32, #tpu.memory_space<smem>>
    %c0_90 = arith.constant 0 : index
    %c1_91 = arith.constant 1 : index
    %c0_92 = arith.constant 0 : index
    %c0_93 = arith.constant 0 : index
    %94 = vector.load %arg4[%c0_90, %c1_91, %c0_92, %c0_93] : memref<1x3x1x256xf32, #tpu.memory_space<vmem>>, vector<1x1x1x256xf32>
    %95 = vector.shape_cast %94 : vector<1x1x1x256xf32> to vector<1x256xf32>
    %96 = vector.broadcast %93 : f32 to vector<1x256xf32>
    %97 = arith.mulf %96, %95 : vector<1x256xf32>
    %98 = arith.addf %92, %97 : vector<1x256xf32>
    %c2_94 = arith.constant 2 : index
    %c4_95 = arith.constant 4 : index
    %99 = memref.load %arg2[%c2_94, %c4_95] : memref<3x6xf32, #tpu.memory_space<smem>>
    %c0_96 = arith.constant 0 : index
    %c1_97 = arith.constant 1 : index
    %c0_98 = arith.constant 0 : index
    %c0_99 = arith.constant 0 : index
    %100 = vector.load %arg5[%c0_96, %c1_97, %c0_98, %c0_99] : memref<1x3x1x256xf32, #tpu.memory_space<vmem>>, vector<1x1x1x256xf32>
    %101 = vector.shape_cast %100 : vector<1x1x1x256xf32> to vector<1x256xf32>
    %102 = vector.broadcast %99 : f32 to vector<1x256xf32>
    %103 = arith.mulf %102, %101 : vector<1x256xf32>
    %104 = arith.addf %98, %103 : vector<1x256xf32>
    %c2_100 = arith.constant 2 : index
    %c2_101 = arith.constant 2 : index
    %105 = memref.load %arg2[%c2_100, %c2_101] : memref<3x6xf32, #tpu.memory_space<smem>>
    %c0_102 = arith.constant 0 : index
    %c2_103 = arith.constant 2 : index
    %c0_104 = arith.constant 0 : index
    %c0_105 = arith.constant 0 : index
    %106 = vector.load %arg4[%c0_102, %c2_103, %c0_104, %c0_105] : memref<1x3x1x256xf32, #tpu.memory_space<vmem>>, vector<1x1x1x256xf32>
    %107 = vector.shape_cast %106 : vector<1x1x1x256xf32> to vector<1x256xf32>
    %108 = vector.broadcast %105 : f32 to vector<1x256xf32>
    %109 = arith.mulf %108, %107 : vector<1x256xf32>
    %110 = arith.addf %104, %109 : vector<1x256xf32>
    %c2_106 = arith.constant 2 : index
    %c5_107 = arith.constant 5 : index
    %111 = memref.load %arg2[%c2_106, %c5_107] : memref<3x6xf32, #tpu.memory_space<smem>>
    %c0_108 = arith.constant 0 : index
    %c2_109 = arith.constant 2 : index
    %c0_110 = arith.constant 0 : index
    %c0_111 = arith.constant 0 : index
    %112 = vector.load %arg5[%c0_108, %c2_109, %c0_110, %c0_111] : memref<1x3x1x256xf32, #tpu.memory_space<vmem>>, vector<1x1x1x256xf32>
    %113 = vector.shape_cast %112 : vector<1x1x1x256xf32> to vector<1x256xf32>
    %114 = vector.broadcast %111 : f32 to vector<1x256xf32>
    %115 = arith.mulf %114, %113 : vector<1x256xf32>
    %116 = arith.addf %110, %115 : vector<1x256xf32>
    %c2_112 = arith.constant 2 : index
    %117 = memref.load %arg3[%c2_112] : memref<3xf32, #tpu.memory_space<smem>>
    %118 = vector.broadcast %117 : f32 to vector<1x256xf32>
    %119 = arith.addf %116, %118 : vector<1x256xf32>
    %c0_113 = arith.constant 0 : index
    %c2_114 = arith.constant 2 : index
    %c0_115 = arith.constant 0 : index
    %c0_116 = arith.constant 0 : index
    %120 = vector.load %arg6[%c0_113, %c2_114, %c0_115, %c0_116] : memref<1x3x1x256xf32, #tpu.memory_space<vmem>>, vector<1x1x1x256xf32>
    %121 = vector.shape_cast %120 : vector<1x1x1x256xf32> to vector<1x256xf32>
    %122 = vector.shape_cast %119 : vector<1x256xf32> to vector<1x1x1x256xf32>
    tpu.vector_store %arg6[%c0_113, %c2_114, %c0_115, %c0_116], %122 {strides = array<i32>} : memref<1x3x1x256xf32, #tpu.memory_space<vmem>>, vector<1x1x1x256xf32>,
    return
  }
  func.func @transform_0(%arg0: i32, %arg1: i32) -> (i32, i32) {
    %c0_i32 = arith.constant 0 : i32
    %c0_i32_0 = arith.constant 0 : i32
    %c0_i32_1 = arith.constant 0 : i32
    return %c0_i32, %c0_i32_0 : i32, i32
  }
  func.func @transform_1(%arg0: i32, %arg1: i32) -> i32 {
    %c0_i32 = arith.constant 0 : i32
    %c0_i32_0 = arith.constant 0 : i32
    return %c0_i32 : i32
  }
  func.func @transform_2(%arg0: i32, %arg1: i32) -> (i32, i32, i32, i32) {
    %c0_i32 = arith.constant 0 : i32
    %c0_i32_0 = arith.constant 0 : i32
    %c0_i32_1 = arith.constant 0 : i32
    return %arg0, %c0_i32, %arg1, %c0_i32_0 : i32, i32, i32, i32
  }
  func.func @transform_3(%arg0: i32, %arg1: i32) -> (i32, i32, i32, i32) {
    %c0_i32 = arith.constant 0 : i32
    %c0_i32_0 = arith.constant 0 : i32
    %c0_i32_1 = arith.constant 0 : i32
    return %arg0, %c0_i32, %arg1, %c0_i32_0 : i32, i32, i32, i32
  }
  func.func @transform_4(%arg0: i32, %arg1: i32) -> (i32, i32, i32, i32) {
    %c0_i32 = arith.constant 0 : i32
    %c0_i32_0 = arith.constant 0 : i32
    %c0_i32_1 = arith.constant 0 : i32
    return %arg0, %c0_i32, %arg1, %c0_i32_0 : i32, i32, i32, i32
  }
}

</mosaic_0001>

<bundles_post_ra>
// kernel: tpu_custom_call.1
= control target key start
LH: loop header
LB: loop body
LE: loop exit
PB: predicated region body
PF: predicated region fallthrough
CT: control target
= control target key end

     0   :  { %s1161_s0 = inlined_call_operand.hbm [shape: f32[3,6], index: 0, kind: input, shape index: {}]   ;;  %s1162_s1 = inlined_call_operand.hbm [shape: f32[3], index: 1, kind: input, shape index: {}]   ;;  %s1163_s2 = inlined_call_operand.hbm [shape: f32[2,3,1,256], index: 2, kind: input, shape index: {}]   ;;  %s1164_s3 = inlined_call_operand.hbm [shape: f32[2,3,1,256], index: 3, kind: input, shape index: {}]   ;;  %s1165_s4 = inlined_call_operand.hbm [shape: f32[2,3,1,256], index: 4, kind: output, shape index: {}]  }
   0x1   :  { %1168 = sst [smem:[#allocation19_spill]] %s1161_s0 }
   0x2   :  { %1169 = sst [smem:[#allocation20_spill]] %s1162_s1 }
   0x3   :  { %9 = vsyncpa [#allocation5], 0 }
   0x4   :  { %10 = vsyncpa [#allocation7], 0 }
   0x5   :  { %11 = vsyncpa [#allocation3], 0 }
   0x6   :  { %13 = vsyncpa [#allocation3 + $0x1], 0 }
   0x7   :  { %14 = vsyncpa [#allocation10], 0 }
   0x8   :  { %16 = vsyncpa [#allocation10 + $0x1], 0 }
   0x9   :  { %17 = vsyncpa [#allocation4], 0 }
   0xa   :  { %19 = vsyncpa [#allocation4 + $0x1], 0  ;;  %s924_s15 = smov 0   ;;  %s926_s16 = smov 0  }
   0xb   :  { %s928_s17 = smov 0   ;;  %s930_s18 = smov 0  }
   0xc   :  { %s932_s19 = smov 0   ;;  %s934_s20 = smov 0  }
   0xd LB: > { %1170 = sst [smem:[#allocation17_spill]] %s887_s19  ;;  %s565_s21 = sadd.s32 4294967295, %s891_s20   ;;  %s891_s20 = sphi %s934_s20, %s25_s20   ;;  %s887_s19 = sphi %s932_s19, %s1184_s19   ;;  %s883_s18 = sphi %s930_s18, %s1183_s18   ;;  %s879_s17 = sphi %s928_s17, %s1187_s17   ;;  %s875_s16 = sphi %s926_s16, %s1186_s16   ;;  %s871_s15 = sphi %s924_s15, %s1185_s15  }
   0xe   : > { %s566_s22 = sadd.s32 4294967294, %s891_s20   ;;  %s88_s23 = sadd.s32 1, %s879_s17 }
   0xf   : > { %p95_p0 = scmp.ne.s32.totalorder %s879_s17, %s875_s16  ;;  %p96_p1 = scmp.eq.s32.totalorder %s891_s20, 0 }
  0x10   : > { %p101_p2 = scmp.ne.s32.totalorder %s875_s16, %s871_s15  ;;  %p962_p3 = scmp.eq.s32.totalorder %s565_s21, 0 }
  0x11   : > { %p155_p4 = scmp.eq.s32.totalorder %s565_s21, 1  ;;  %p966_p5 = por %p96_p1, %p95_p0 }
  0x12   : > { %p161_p6 = scmp.eq.s32.totalorder %s566_s22, 1  ;;  %p972_p7 = por %p962_p3, %p101_p2 }
  0x13   : > { %p976_p8 = por %p155_p4, %p95_p0  ;;  %p567_p10 = scmp.ge.s32.totalorder %s891_s20, 1 }
  0x14   : > { %p980_p9 = por %p161_p6, %p101_p2  ;;  %p168_p11 = scmp.lt.s32.totalorder %s891_s20, 3 }
  0x15   : > { %s1176_s0 = sld [smem:[#allocation19_spill]]  ;;  %p570_p13 = scmp.ge.s32.totalorder %s891_s20, 2 }
  0x16   : > { %p989_p12 = pnand %p567_p10, %p168_p11  ;;  %p649_p0 = scmp.lt.s32.totalorder %s891_s20, 2 }
  0x17   : > { %s1178_s1 = sld [smem:[#allocation20_spill]]  ;;  %s893_s11 = smov [#allocation2]  }
  0x18   : > { %p629_p1 = pneg %p989_p12  ;;  %p1002_p2 = pnand %p649_p0, %p966_p5 }
  0x19   : > { %s894_s12 = smov [#allocation6]   ;;  %s37_s13 = sadd.s32 1, %s887_s19 }
  0x1a   : > { %p630_p4 = pnand %p629_p1, %p962_p3  ;;  %s1010_s14 = sand.u32 1, %s879_s17  }
  0x1b   : > { %s180_s5 = sshll.u32 %s1176_s0, 4  ;;  %p39_p6 = scmp.ge.s32.totalorder %s37_s13, 2  ;;  %s181_s5 = int_to_ptr.hbm [resolvable:$true] %s180_s5 }
  0x1c   : > { %632 = dma.hbm_to_smem (!%p630_p4), %s181_s5, 64, %s893_s11, [#allocation5]  }
  0x1d   : > { %s190_s9 = sshll.u32 %s1178_s1, 4  ;;  %s609_s21 = smul.u32 6, %s1010_s14  ;;  %s191_s9 = int_to_ptr.hbm [resolvable:$true] %s190_s9 }
  0x1e   : > { %635 = dma.hbm_to_smem (!%p630_p4), %s191_s9, 16, %s894_s12, [#allocation7]  }
  0x1f   : > { %s1189_s13 = smov (%p39_p6, %s37_s13), 0  ;;  %s610_s22 = smul.u32 6, %s887_s19 }
  0x20   : > { %1180 = sst [smem:[#allocation18_spill]] %s1189_s13  ;;  %s83_s25 = ssub.s32 %s887_s19, %s1189_s13 }
  0x21   : > { %s205_s29 = scalar_lea.vmem [#allocation8], %s609_s21  ;;  %p86_p5 = scmp.eq.s32.totalorder %s83_s25, 0 }
  0x22   : > { %s214_s30 = sshll.u32 %s205_s29, 4  ;;  %s211_s8 = scalar_lea.hbm %s1163_s2, %s610_s22  ;;  %s215_s30 = int_to_ptr.vmem [resolvable:$true] %s214_s30 }
  0x23   : > { %s212_s9 = sshll.u32 %s211_s8, 4  ;;  %s202_s12 = scalar_lea.sflag [#allocation3], %s1010_s14  ;;  %s213_s9 = int_to_ptr.hbm [resolvable:$true] %s212_s9 }
  0x24   : > { %s1024_s11 = scalar_select %p86_p5, %s879_s17, %s88_s23  }
  0x25   : > { %s895_s0 = smov 32   ;;  %s896_s1 = smov 2  }
  0x26   : > { %639 = dma.hbm_to_vmem [thread:$0]  (!%p1002_p2), %s213_s9, 96, %s215_s30, %s202_s12, %s895_s0, %s895_s0, %s896_s1  }
  0x27   : > { %s234_s25 = scalar_lea.hbm %s1164_s3, %s610_s22  ;;  %s228_s19 = scalar_lea.vmem [#allocation9], %s609_s21 }
  0x28   : > { %s237_s5 = sshll.u32 %s228_s19, 4  ;;  %s235_s7 = sshll.u32 %s234_s25, 4  ;;  %s238_s5 = int_to_ptr.vmem [resolvable:$true] %s237_s5  ;;  %s236_s7 = int_to_ptr.hbm [resolvable:$true] %s235_s7 }
  0x29   : > { %s225_s8 = scalar_lea.sflag [#allocation10], %s1010_s14  ;;  %249 = sbr.rel (%p989_p12) target bundleno = 98 (0x62), region = 36 }
  0x2a   : > { %642 = dma.hbm_to_vmem [thread:$0]  (!%p1002_p2), %s236_s7, 96, %s238_s5, %s225_s8, %s895_s0, %s895_s0, %s896_s1  }
  0x2e   : > { %850 = dma.done.wait (%p962_p3), [#allocation5], 64  }
  0x2f   : > { %852 = vsyncadd (%p962_p3), [#allocation5], 4294967232 }
  0x30   : > { %854 = dma.done.wait (%p962_p3), [#allocation7], 16  }
  0x31   : > { %856 = vsyncadd (%p962_p3), [#allocation7], 4294967280  ;;  %s1046_s19 = sand.u32 1, %s875_s16  }
  0x32   : > { %s1049_s0 = smul.u32 6, %s1046_s19  ;;  %s262_s1 = scalar_lea.sflag [#allocation3], %s1046_s19 }
  0x34   : > { %s1053_s23 = scalar_lea.vmem [#allocation8], %s1049_s0 }
  0x35   : > { %858 = dma.done.wait (%p972_p7), %s262_s1, 96  }
  0x36   : > { %860 = vsyncadd (%p972_p7), %s262_s1, 4294967200  ;;  %s272_s24 = scalar_lea.sflag [#allocation10], %s1046_s19  ;;  %s1061_s6 = scalar_lea.vmem [#allocation9], %s1049_s0 }
  0x37   : > { %862 = dma.done.wait (%p972_p7), %s272_s24, 96  }
  0x38   : > { %864 = vsyncadd (%p972_p7), %s272_s24, 4294967200 }
  0x39   : > { %281 = sfence }
  0x3a   : > { %s307_s10 = sld [smem:[#allocation2]]  ;;  %v308_v0 = vld [vmem:[%s1053_s23] sm:$0x3]  ;;  %v312_v1 = vld [vmem:[%s1061_s6] sm:$0x3]  ;;  %v343_v28 = vlaneseq }
  0x3b   : > { %s574_s13 = sld [smem:[#allocation2 + $0x3]]  ;;  %v576_v3 = vld [vmem:[%s1053_s23 + $0x2] sm:$0x3]  ;;  %v578_v6 = vld [vmem:[%s1061_s6 + $0x2] sm:$0x3] }
  0x3c   : > { %s575_s14 = sld [smem:[#allocation2 + $0x1]]  ;;  %v580_v11 = vld [vmem:[%s1053_s23 + $0x4] sm:$0x3]  ;;  %v582_v15 = vld [vmem:[%s1061_s6 + $0x4] sm:$0x3]  ;;  %vm1098_vm0 = vcmp.lt.s32.totalorder %v343_v28, 256 }
  0x3d   : > { %s577_s21 = sld [smem:[#allocation2 + $0x4]]  ;;  %v349_v17 = vld [vmem:[%s1053_s23] sm:$0x3]  ;;  %v353_v20 = vld [vmem:[%s1061_s6] sm:$0x3] }
  0x3e   : > { %s579_s22 = sld [smem:[#allocation2 + $0x2]]  ;;  %v586_v22 = vld [vmem:[%s1053_s23 + $0x2] sm:$0x3]  ;;  %v588_v27 = vld [vmem:[%s1061_s6 + $0x2] sm:$0x3] }
  0x3f   : > { %s1069_s30 = sld [smem:[#allocation2 + $0x5]]  ;;  %v590_v34 = vld [vmem:[%s1053_s23 + $0x4] sm:$0x3]  ;;  %v592_v40 = vld [vmem:[%s1061_s6 + $0x4] sm:$0x3] }
  0x40   : > { %v309_v2 = vstv %s307_s10  ;;  %s1072_s9 = sld [smem:[#allocation6]]  ;;  %v383_v42 = vld [vmem:[%s1053_s23] sm:$0x3]  ;;  %v387_v46 = vld [vmem:[%s1061_s6] sm:$0x3] }
  0x41   : > { %v310_v4 = vmul.f32 %v309_v2, %v308_v0  ;;  %v313_v5 = vstv %s574_s13  ;;  %s583_s26 = sld [smem:[#allocation2 + $0x80]]  ;;  %v598_v49 = vld [vmem:[%s1053_s23 + $0x2] sm:$0x3]  ;;  %v600_v54 = vld [vmem:[%s1061_s6 + $0x2] sm:$0x3] }
  0x42   : > { %v314_v7 = vmul.f32 %v313_v5, %v312_v1  ;;  %v319_v8 = vstv %s575_s14  ;;  %s584_s12 = sld [smem:[#allocation2 + $0x83]]  ;;  %v602_v60 = vld [vmem:[%s1053_s23 + $0x4] sm:$0x3]  ;;  %v604_v2 = vld [vmem:[%s1061_s6 + $0x4] sm:$0x3]  ;;  %s417_s6 = scalar_lea.sflag [#allocation4], %s1046_s19 }
  0x43   : > { %v320_v9 = vmul.f32 %v576_v3, %v319_v8  ;;  %v325_v10 = vstv %s577_s21  ;;  %s585_s29 = sld [smem:[#allocation2 + $0x81]] }
  0x44   : > { %v315_v12 = vadd.f32 %v314_v7, %v310_v4  ;;  %v326_v13 = vmul.f32 %v578_v6, %v325_v10  ;;  %v331_v14 = vstv %s579_s22  ;;  %s587_s25 = sld [smem:[#allocation2 + $0x84]]  ;;  %s1107_s22 = scalar_lea.vmem [#allocation11], %s1049_s0 }
  0x45   : > { %v337_v16 = vstv %s1069_s30  ;;  %s1079_s5 = sld [smem:[#allocation2 + $0x82]]  ;;  %v332_v19 = vmul.f32 %v580_v11, %v331_v14 }
  0x46   : > { %v321_v18 = vadd.f32 %v320_v9, %v315_v12  ;;  %s1082_s7 = sld [smem:[#allocation2 + $0x85]]  ;;  %v338_v24 = vmul.f32 %v582_v15, %v337_v16  ;;  %v341_v35 = vstv %s1072_s9  ;;  %s614_s9 = smul.u32 6, %s883_s18 }
  0x47   : > { %v350_v21 = vstv %s583_s26  ;;  %s1085_s8 = sld [smem:[#allocation6 + $0x1]] }
  0x48   : > { %v327_v23 = vadd.f32 %v326_v13, %v321_v18  ;;  %v351_v25 = vmul.f32 %v350_v21, %v349_v17  ;;  %v354_v26 = vstv %s584_s12  ;;  %s595_s1 = sld [smem:[#allocation2 + $0x100]]  ;;  %s429_s26 = scalar_lea.hbm %s1165_s4, %s614_s9 }
  0x49   : > { %v355_v29 = vmul.f32 %v354_v26, %v353_v20  ;;  %v359_v30 = vstv %s585_s29  ;;  %s1088_s24 = sld [smem:[#allocation2 + $0x103]]  ;;  %s430_s12 = sshll.u32 %s1107_s22, 4  ;;  %s431_s12 = int_to_ptr.vmem [resolvable:$true] %s430_s12 }
  0x4a   : > { %v333_v31 = vadd.f32 %v332_v19, %v327_v23  ;;  %v360_v32 = vmul.f32 %v586_v22, %v359_v30  ;;  %v364_v33 = vstv %s587_s25  ;;  %s597_s10 = sld [smem:[#allocation2 + $0x101]]  ;;  %s432_s18 = sshll.u32 %s429_s26, 4  ;;  %s433_s18 = int_to_ptr.hbm [resolvable:$true] %s432_s18 }
  0x4b   : > { %v356_v36 = vadd.f32 %v355_v29, %v351_v25  ;;  %v365_v37 = vmul.f32 %v588_v27, %v364_v33  ;;  %v369_v38 = vstv %s1079_s5  ;;  %s599_s13 = sld [smem:[#allocation2 + $0x104]]  ;;  %s811_s29 = sshra.s32 %s433_s18, 4  ;;  %s812_s29 = int_to_ptr.hbm [resolvable:$true] %s811_s29 }
  0x4c   : > { %v339_v39 = vadd.f32 %v338_v24, %v333_v31  ;;  %v374_v41 = vstv %s1082_s7  ;;  %s1096_s14 = sld [smem:[#allocation2 + $0x102]]  ;;  %v370_v45 = vmul.f32 %v590_v34, %v369_v38  ;;  %s813_s25 = scalar_lea.hbm %s812_s29, 6 }
  0x4d   : > { %v361_v44 = vadd.f32 %v360_v32, %v356_v36  ;;  %s603_s21 = sld [smem:[#allocation2 + $0x105]]  ;;  %v375_v51 = vmul.f32 %v592_v40, %v374_v41  ;;  %v378_v61 = vstv %s1085_s8  ;;  %p814_p3 = scmp.ne.s32.totalorder %s812_s29, %s813_s25 }
  0x4e   : > { %v342_v47 = vadd.f32 %v341_v35, %v339_v39  ;;  %v384_v48 = vstv %s595_s1  ;;  %s605_s30 = sld [smem:[#allocation6 + $0x2]]  ;;  %s817_s8 = scalar_lea.hbm %s1165_s4, 12 }
  0x4f   : > { %v366_v50 = vadd.f32 %v365_v37, %v361_v44  ;;  %v385_v52 = vmul.f32 %v384_v48, %v383_v42  ;;  %v388_v53 = vstv %s1088_s24  ;;  %p815_p7 = pnand %p814_p3, %p976_p8  ;;  %p818_p11 = scmp.lt.s32.totalorder %s812_s29, %s1165_s4 }
  0x50   : > { %347 = vst.msk [vmem:[%s1107_s22] sm:$0x3] %vm1098_vm0, %v342_v47  ;;  %v389_v55 = vmul.f32 %v388_v53, %v387_v46  ;;  %v393_v56 = vstv %s597_s10  ;;  %p819_p12 = scmp.lt.s32.totalorder %s817_s8, %s813_s25 }
  0x51   : > { %v371_v57 = vadd.f32 %v370_v45, %v366_v50  ;;  %v394_v58 = vmul.f32 %v598_v49, %v393_v56  ;;  %v398_v59 = vstv %s599_s13  ;;  %p816_p10 = pneg %p815_p7 }
  0x52   : > { %v390_v62 = vadd.f32 %v389_v55, %v385_v52  ;;  %v399_v63 = vmul.f32 %v600_v54, %v398_v59  ;;  %v403_v0 = vstv %s1096_s14  ;;  %p820_p0 = por %p819_p12, %p818_p11 }
  0x53   : > { %v376_v1 = vadd.f32 %v375_v51, %v371_v57  ;;  %v408_v3 = vstv %s603_s21  ;;  %v404_v5 = vmul.f32 %v602_v60, %v403_v0 }
  0x54   : > { %v395_v4 = vadd.f32 %v394_v58, %v390_v62  ;;  %v409_v8 = vmul.f32 %v604_v2, %v408_v3  ;;  %v412_v10 = vstv %s605_s30  ;;  %p821_p1 = pnand %p820_p0, %p816_p10 }
  0x55   : > { %v379_v6 = vadd.f32 %v378_v61, %v376_v1 }
  0x56   : > { %v400_v7 = vadd.f32 %v399_v63, %v395_v4 }
  0x57   : > { %594 = vst.msk [vmem:[%s1107_s22 + $0x2] sm:$0x3] %vm1098_vm0, %v379_v6 }
  0x58   : > { %v405_v9 = vadd.f32 %v404_v5, %v400_v7 }
  0x5a   : > { %v410_v11 = vadd.f32 %v409_v8, %v405_v9 }
  0x5c   : > { %v413_v12 = vadd.f32 %v412_v10, %v410_v11 }
  0x5e   : > { %606 = vst.msk [vmem:[%s1107_s22 + $0x4] sm:$0x3] %vm1098_vm0, %v413_v12 }
  0x5f   : > { %824 = shalt.err (!%p821_p1)
}
  0x60   : > { %s897_s19 = smov 32   ;;  %s898_s10 = smov 2  }
  0x61   : > { %627 = dma.vmem_to_hbm [thread:$0]  (%p976_p8), %s431_s12, 96, %s433_s18, %s417_s6, %s897_s19, %s897_s19, %s898_s10  }
  0x62 PF: > { %s447_s13 = sand.u32 1, %s871_s15   ;;  %p644_p2 = pnand %p570_p13, %p980_p9 }
  0x63   : > { %s448_s14 = scalar_lea.sflag [#allocation4], %s447_s13 }
  0x64   : > { %p645_p4 = pneg %p644_p2 }
  0x66   : > { %866 = dma.done.wait (%p645_p4), %s448_s14, 96  }
  0x67   : > { %868 = vsyncadd (%p645_p4), %s448_s14, 4294967200  ;;  %s25_s20 = sadd.s32 1, %s891_s20   ;;  %s1183_s18 = sld [smem:[#allocation17_spill]] }
  0x68   : > { %p22_p6 = scmp.ge.s32.totalorder %s25_s20, 4   ;;  %s1184_s19 = sld [smem:[#allocation18_spill]] }
  0x69   : > { %s1185_s15 = smov %s875_s16  ;;  %s1186_s16 = smov %s879_s17 }
  0x6a   : > { %s1187_s17 = smov %s1024_s11  ;;  %24 = sbr.rel (!%p22_p6) target bundleno = 13 (0xd), region = 109 }
  0x6f   :  { %454 = vsyncpa [#allocation3], 1 }
  0x70   :  { %456 = vsyncpa [#allocation3 + $0x1], 1 }
  0x71   :  { %457 = vsyncpa [#allocation10], 1 }
  0x72   :  { %459 = vsyncpa [#allocation10 + $0x1], 1 }
  0x73   :  { %460 = vsyncpa [#allocation4], 1 }
  0x74   :  { %462 = vsyncpa [#allocation4 + $0x1], 1 }
  0x75   :  { %463 = vsyncpa [#allocation5], 1 }
  0x76   :  { %465 = vsyncpa [#allocation5 + $0x1], 1 }
  0x77   :  { %466 = vsyncpa [#allocation7], 1 }

</bundles_post_ra>
